<compile_context>
chip_gen: v6e
topology: v6e:2x2x1
jax: 0.10.0
libtpu: 0.0.40
codegen_flags: <defaults>
</compile_context>

<pallas_src>
import functools

import jax
import jax.numpy as jnp
from jax.experimental import pallas as pl
from jax.experimental.pallas import tpu as pltpu

LANE = 128     # lane width (last-dim tiling)
SUBLANE = 8    # f32 sublane count (second-to-last-dim tiling)


def _round_up(n, m):
    return ((n + m - 1) // m) * m


def _cdiv(a, b):
    return -(-a // b)


def mlp_kernel(x_ref, w1_ref, b1_ref, w2_ref, b2_ref, w3_ref, b3_ref, o_ref):
    # x_ref: (TB, IN) f32; w1: (IN, 512) bf16; w2: (512, 512) bf16;
    # w3: (512, OUT_PAD) bf16; biases: (1, N) f32; o_ref: (TB, OUT_PAD) f32.
    x = x_ref[...].astype(jnp.bfloat16)          # VPU cast, hides under MXU slack
    h1 = jnp.dot(x, w1_ref[...], preferred_element_type=jnp.float32) + b1_ref[...]
    h1 = jnp.maximum(h1, 0.0).astype(jnp.bfloat16)
    h2 = jnp.dot(h1, w2_ref[...], preferred_element_type=jnp.float32) + b2_ref[...]
    h2 = jnp.maximum(h2, 0.0).astype(jnp.bfloat16)
    h3 = jnp.dot(h2, w3_ref[...], preferred_element_type=jnp.float32) + b3_ref[...]
    # The PyTorch module applies ReLU after the final Linear as well.
    o_ref[...] = jnp.maximum(h3, 0.0)


def prepare_params(params):
    """One-time parameter prep (call once, reuse across forward calls):
    bf16 matmul weights, f32 biases, final layer zero-padded to a lane-dense
    multiple of 128 columns."""
    w1, b1, w2, b2, w3, b3 = params
    out_dim = w3.shape[1]
    out_pad = _round_up(out_dim, LANE)
    if out_pad != out_dim:
        w3 = jnp.pad(w3, ((0, 0), (0, out_pad - out_dim)))
        b3 = jnp.pad(b3, ((0, 0), (0, out_pad - out_dim)))
    return (
        w1.astype(jnp.bfloat16), b1.astype(jnp.float32),
        w2.astype(jnp.bfloat16), b2.astype(jnp.float32),
        w3.astype(jnp.bfloat16), b3.astype(jnp.float32),
    )


def _choose_batch_tile(B, tb):
    """Pick a batch tile that (a) wastes at most ~one sublane group of padding
    per tile and (b) yields >= 2 grid steps when B >= 16 so the second
    TensorCore on v7x gets work via the parallel batch axis."""
    n_tiles = max(_cdiv(B, tb), 1)
    if n_tiles == 1 and B >= 2 * SUBLANE:
        n_tiles = 2
    tb_eff = _round_up(_cdiv(B, n_tiles), SUBLANE)
    n_tiles = _cdiv(B, tb_eff)
    return tb_eff, n_tiles


def _const_block_spec(shape, index_map):
    # Weight/bias blocks never change across grid steps; single-buffer them.
    try:
        return pl.BlockSpec(shape, index_map, pipeline_mode=pl.Buffered(1))
    except TypeError:
        return pl.BlockSpec(shape, index_map)


@functools.partial(jax.jit, static_argnames=("out_dim", "tb"))
def mlp_forward(x, prepared_params, *, out_dim=19, tb=1024):
    """x: (B, H, W) float32; prepared_params from prepare_params().
    Returns (B, out_dim) float32."""
    B = x.shape[0]
    x2d = x.reshape(B, -1).astype(jnp.float32)    # same as torch .view on contiguous
    in_dim = x2d.shape[1]
    w1, b1, w2, b2, w3, b3 = prepared_params
    hidden = w1.shape[1]
    out_pad = w3.shape[1]

    tb_eff, n_tiles = _choose_batch_tile(B, tb)
    B_pad = tb_eff * n_tiles
    if B_pad != B:
        x2d = jnp.pad(x2d, ((0, B_pad - B), (0, 0)))

    full = lambda i: (0, 0)

    flops = 2 * B_pad * (in_dim * hidden + hidden * hidden + hidden * out_pad)
    bytes_accessed = (
        B_pad * in_dim * 4                                  # x (f32, read in-kernel)
        + (w1.size + w2.size + w3.size) * 2                 # bf16 weights
        + (b1.size + b2.size + b3.size) * 4                 # f32 biases
        + B_pad * out_pad * 4                               # f32 output
    )

    out = pl.pallas_call(
        mlp_kernel,
        out_shape=jax.ShapeDtypeStruct((B_pad, out_pad), jnp.float32),
        grid_spec=pltpu.PrefetchScalarGridSpec(
            num_scalar_prefetch=0,
            grid=(n_tiles,),
            in_specs=[
                pl.BlockSpec((tb_eff, in_dim), lambda i: (i, 0)),   # x tile (f32)
                _const_block_spec((in_dim, hidden), full),          # w1
                _const_block_spec((1, hidden), full),               # b1
                _const_block_spec((hidden, hidden), full),          # w2
                _const_block_spec((1, hidden), full),               # b2
                _const_block_spec((hidden, out_pad), full),         # w3 (padded)
                _const_block_spec((1, out_pad), full),              # b3 (padded)
            ],
            out_specs=pl.BlockSpec((tb_eff, out_pad), lambda i: (i, 0)),
        ),
        compiler_params=pltpu.CompilerParams(
            dimension_semantics=("parallel",),
            vmem_limit_bytes=32 * 1024 * 1024,   # safe on v5e/v6e/v7x, headroom for tb=1024+
        ),
        cost_estimate=pl.CostEstimate(
            flops=flops, transcendentals=0, bytes_accessed=bytes_accessed),
    )(x2d, w1, b1, w2, b2, w3, b3)

    return out[:B, :out_dim]


def init_params(key, in_dim, hidden=512, out_dim=19):
    """Deterministic synthetic params. Weights stored as (in, out) = W.T."""
    ks = jax.random.split(key, 6)

    def lin(kw, kb, fan_in, fan_out):
        bound = 1.0 / jnp.sqrt(fan_in)
        w = jax.random.uniform(kw, (fan_in, fan_out), jnp.float32, -bound, bound)
        b = jax.random.uniform(kb, (1, fan_out), jnp.float32, -bound, bound)
        return w, b

    w1, b1 = lin(ks[0], ks[1], in_dim, hidden)
    w2, b2 = lin(ks[2], ks[3], hidden, hidden)
    w3, b3 = lin(ks[4], ks[5], hidden, out_dim)
    return (w1, b1, w2, b2, w3, b3)


def mlp_reference_bf16(x, params):
    """Plain-JAX reference mimicking the kernel's bf16-matmul / f32-acc numerics."""
    w1, b1, w2, b2, w3, b3 = params
    h = x.reshape(x.shape[0], -1).astype(jnp.bfloat16)
    h = jnp.maximum(
        jnp.dot(h, w1.astype(jnp.bfloat16), preferred_element_type=jnp.float32) + b1,
        0.0).astype(jnp.bfloat16)
    h = jnp.maximum(
        jnp.dot(h, w2.astype(jnp.bfloat16), preferred_element_type=jnp.float32) + b2,
        0.0).astype(jnp.bfloat16)
    return jnp.maximum(
        jnp.dot(h, w3.astype(jnp.bfloat16), preferred_element_type=jnp.float32) + b3,
        0.0)


def mlp_reference_f32(x, params):
    w1, b1, w2, b2, w3, b3 = params
    h = x.reshape(x.shape[0], -1)
    h = jnp.maximum(h @ w1 + b1, 0.0)
    h = jnp.maximum(h @ w2 + b2, 0.0)
    return jnp.maximum(h @ w3 + b3, 0.0)


if __name__ == "__main__":
    H, W = 16, 16
    B = 10   # deliberately NOT a multiple of 8 to exercise the remainder/pad path
    key = jax.random.PRNGKey(0)
    kx, kp = jax.random.split(key)
    x = jax.random.normal(kx, (B, H, W), dtype=jnp.float32)
    params = init_params(kp, H * W)

    # One-time parameter prep (cast + pad), reused across forward calls.
    prepared = jax.block_until_ready(prepare_params(params))

    out = jax.block_until_ready(mlp_forward(x, prepared))

    ref_bf16 = mlp_reference_bf16(x, params)
    ref_f32 = mlp_reference_f32(x, params)

    assert out.shape == (B, 19), out.shape
    assert jnp.allclose(out, ref_bf16, atol=1e-2, rtol=1e-2), (
        "mismatch vs bf16-path reference, max abs diff = "
        f"{float(jnp.max(jnp.abs(out - ref_bf16)))}")
    # Semantics check vs full-f32 forward (looser: bf16 matmul rounding).
    assert jnp.allclose(out, ref_f32, atol=5e-2, rtol=5e-2), (
        "mismatch vs f32 reference, max abs diff = "
        f"{float(jnp.max(jnp.abs(out - ref_f32)))}")
    print("KERNEL_OK")
</pallas_src>

<mosaic_0001>
module attributes {stable_mosaic.version = 11 : i64} {
  func.func @mlp_kernel(%arg0: i32, %arg1: memref<16x256xf32, #tpu.memory_space<vmem>>, %arg2: memref<256x512xbf16, #tpu.memory_space<vmem>>, %arg3: memref<1x512xf32, #tpu.memory_space<vmem>>, %arg4: memref<512x512xbf16, #tpu.memory_space<vmem>>, %arg5: memref<1x512xf32, #tpu.memory_space<vmem>>, %arg6: memref<512x128xbf16, #tpu.memory_space<vmem>>, %arg7: memref<1x128xf32, #tpu.memory_space<vmem>>, %arg8: memref<16x128xf32, #tpu.memory_space<vmem>>) attributes {dimension_semantics = [#tpu.dimension_semantics<parallel>], iteration_bounds = array<i64: 1>, scalar_prefetch = 0 : i64, scratch_operands = 0 : i64, tpu.core_type = #tpu.core_type<tc>, window_params = [{transform_indices = @transform_0, window_bounds = array<i64: 16, 256>}, {pipeline_mode = #tpu.pipeline_mode<synchronous>, transform_indices = @transform_1, window_bounds = array<i64: 256, 512>}, {pipeline_mode = #tpu.pipeline_mode<synchronous>, transform_indices = @transform_2, window_bounds = array<i64: 1, 512>}, {pipeline_mode = #tpu.pipeline_mode<synchronous>, transform_indices = @transform_3, window_bounds = array<i64: 512, 512>}, {pipeline_mode = #tpu.pipeline_mode<synchronous>, transform_indices = @transform_4, window_bounds = array<i64: 1, 512>}, {pipeline_mode = #tpu.pipeline_mode<synchronous>, transform_indices = @transform_5, window_bounds = array<i64: 512, 128>}, {pipeline_mode = #tpu.pipeline_mode<synchronous>, transform_indices = @transform_6, window_bounds = array<i64: 1, 128>}, {transform_indices = @transform_7, window_bounds = array<i64: 16, 128>}]} {
    %c0 = arith.constant 0 : index
    %c0_0 = arith.constant 0 : index
    %0 = vector.load %arg1[%c0, %c0_0] : memref<16x256xf32, #tpu.memory_space<vmem>>, vector<16x256xf32>
    %1 = arith.truncf %0 : vector<16x256xf32> to vector<16x256xbf16>
    %c0_1 = arith.constant 0 : index
    %c0_2 = arith.constant 0 : index
    %2 = vector.load %arg2[%c0_1, %c0_2] : memref<256x512xbf16, #tpu.memory_space<vmem>>, vector<256x512xbf16>
    %cst = arith.constant dense<0.000000e+00> : vector<16x512xf32>
    %3 = tpu.matmul %1, %2, %cst {dimension_numbers = #tpu.dot_dimension_numbers<[1], [0], [0], [1], [0, 0, 1, 1], [], []>} : vector<16x256xbf16>, vector<256x512xbf16>, vector<16x512xf32> -> vector<16x512xf32>
    %c0_3 = arith.constant 0 : index
    %c0_4 = arith.constant 0 : index
    %4 = vector.load %arg3[%c0_3, %c0_4] : memref<1x512xf32, #tpu.memory_space<vmem>>, vector<1x512xf32>
    %5 = vector.broadcast %4 : vector<1x512xf32> to vector<16x512xf32>
    %6 = arith.addf %3, %5 : vector<16x512xf32>
    %cst_5 = arith.constant 0.000000e+00 : f32
    %7 = vector.broadcast %cst_5 : f32 to vector<16x512xf32>
    %8 = arith.maximumf %6, %7 : vector<16x512xf32>
    %9 = arith.truncf %8 : vector<16x512xf32> to vector<16x512xbf16>
    %c0_6 = arith.constant 0 : index
    %c0_7 = arith.constant 0 : index
    %10 = vector.load %arg4[%c0_6, %c0_7] : memref<512x512xbf16, #tpu.memory_space<vmem>>, vector<512x512xbf16>
    %cst_8 = arith.constant dense<0.000000e+00> : vector<16x512xf32>
    %11 = tpu.matmul %9, %10, %cst_8 {dimension_numbers = #tpu.dot_dimension_numbers<[1], [0], [0], [1], [0, 0, 1, 1], [], []>} : vector<16x512xbf16>, vector<512x512xbf16>, vector<16x512xf32> -> vector<16x512xf32>
    %c0_9 = arith.constant 0 : index
    %c0_10 = arith.constant 0 : index
    %12 = vector.load %arg5[%c0_9, %c0_10] : memref<1x512xf32, #tpu.memory_space<vmem>>, vector<1x512xf32>
    %13 = vector.broadcast %12 : vector<1x512xf32> to vector<16x512xf32>
    %14 = arith.addf %11, %13 : vector<16x512xf32>
    %cst_11 = arith.constant 0.000000e+00 : f32
    %15 = vector.broadcast %cst_11 : f32 to vector<16x512xf32>
    %16 = arith.maximumf %14, %15 : vector<16x512xf32>
    %17 = arith.truncf %16 : vector<16x512xf32> to vector<16x512xbf16>
    %c0_12 = arith.constant 0 : index
    %c0_13 = arith.constant 0 : index
    %18 = vector.load %arg6[%c0_12, %c0_13] : memref<512x128xbf16, #tpu.memory_space<vmem>>, vector<512x128xbf16>
    %cst_14 = arith.constant dense<0.000000e+00> : vector<16x128xf32>
    %19 = tpu.matmul %17, %18, %cst_14 {dimension_numbers = #tpu.dot_dimension_numbers<[1], [0], [0], [1], [0, 0, 1, 1], [], []>} : vector<16x512xbf16>, vector<512x128xbf16>, vector<16x128xf32> -> vector<16x128xf32>
    %c0_15 = arith.constant 0 : index
    %c0_16 = arith.constant 0 : index
    %20 = vector.load %arg7[%c0_15, %c0_16] : memref<1x128xf32, #tpu.memory_space<vmem>>, vector<1x128xf32>
    %21 = vector.broadcast %20 : vector<1x128xf32> to vector<16x128xf32>
    %22 = arith.addf %19, %21 : vector<16x128xf32>
    %cst_17 = arith.constant 0.000000e+00 : f32
    %23 = vector.broadcast %cst_17 : f32 to vector<16x128xf32>
    %24 = arith.maximumf %22, %23 : vector<16x128xf32>
    %c0_18 = arith.constant 0 : index
    %c0_19 = arith.constant 0 : index
    %25 = vector.load %arg8[%c0_18, %c0_19] : memref<16x128xf32, #tpu.memory_space<vmem>>, vector<16x128xf32>
    tpu.vector_store %arg8[%c0_18, %c0_19], %24 {strides = array<i32>} : memref<16x128xf32, #tpu.memory_space<vmem>>, vector<16x128xf32>,
    return
  }
  func.func @transform_0(%arg0: i32) -> (i32, i32) {
    %c0_i32 = arith.constant 0 : i32
    %c0_i32_0 = arith.constant 0 : i32
    return %arg0, %c0_i32 : i32, i32
  }
  func.func @transform_1(%arg0: i32) -> (i32, i32) {
    %c0_i32 = arith.constant 0 : i32
    %c0_i32_0 = arith.constant 0 : i32
    %c0_i32_1 = arith.constant 0 : i32
    return %c0_i32, %c0_i32_0 : i32, i32
  }
  func.func @transform_2(%arg0: i32) -> (i32, i32) {
    %c0_i32 = arith.constant 0 : i32
    %c0_i32_0 = arith.constant 0 : i32
    %c0_i32_1 = arith.constant 0 : i32
    return %c0_i32, %c0_i32_0 : i32, i32
  }
  func.func @transform_3(%arg0: i32) -> (i32, i32) {
    %c0_i32 = arith.constant 0 : i32
    %c0_i32_0 = arith.constant 0 : i32
    %c0_i32_1 = arith.constant 0 : i32
    return %c0_i32, %c0_i32_0 : i32, i32
  }
  func.func @transform_4(%arg0: i32) -> (i32, i32) {
    %c0_i32 = arith.constant 0 : i32
    %c0_i32_0 = arith.constant 0 : i32
    %c0_i32_1 = arith.constant 0 : i32
    return %c0_i32, %c0_i32_0 : i32, i32
  }
  func.func @transform_5(%arg0: i32) -> (i32, i32) {
    %c0_i32 = arith.constant 0 : i32
    %c0_i32_0 = arith.constant 0 : i32
    %c0_i32_1 = arith.constant 0 : i32
    return %c0_i32, %c0_i32_0 : i32, i32
  }
  func.func @transform_6(%arg0: i32) -> (i32, i32) {
    %c0_i32 = arith.constant 0 : i32
    %c0_i32_0 = arith.constant 0 : i32
    %c0_i32_1 = arith.constant 0 : i32
    return %c0_i32, %c0_i32_0 : i32, i32
  }
  func.func @transform_7(%arg0: i32) -> (i32, i32) {
    %c0_i32 = arith.constant 0 : i32
    %c0_i32_0 = arith.constant 0 : i32
    return %arg0, %c0_i32 : i32, i32
  }
}

</mosaic_0001>

<bundles_post_ra>
// kernel: mlp_forward.1
= control target key start
LH: loop header
LB: loop body
LE: loop exit
PB: predicated region body
PF: predicated region fallthrough
CT: control target
= control target key end

     0   :  { %12 = vsyncpa [#allocation3], 0  ;;  %s2772_s0 = inlined_call_operand.vmem [shape: f32[16,256], index: 0, kind: input, shape index: {}]   ;;  %s2773_s1 = inlined_call_operand.hbm [shape: bf16[256,512], index: 1, kind: input, shape index: {}]   ;;  %s2774_s2 = inlined_call_operand.vmem [shape: f32[1,512], index: 2, kind: input, shape index: {}]   ;;  %s2775_s3 = inlined_call_operand.hbm [shape: bf16[512,512], index: 3, kind: input, shape index: {}]   ;;  %s2776_s4 = inlined_call_operand.vmem [shape: f32[1,512], index: 4, kind: input, shape index: {}]   ;;  %s2777_s5 = inlined_call_operand.vmem [shape: bf16[512,128], index: 5, kind: input, shape index: {}]   ;;  %s2778_s6 = inlined_call_operand.vmem [shape: f32[1,128], index: 6, kind: input, shape index: {}]   ;;  %s2779_s7 = inlined_call_operand.hbm [shape: f32[16,128], index: 7, kind: output, shape index: {}]  }
   0x1   :  { %13 = vsyncpa [#allocation6], 0 }
   0x2   :  { %14 = vsyncpa [#allocation4], 0  ;;  %s2569_s24 = smov [#allocation2]  }
   0x3   :  { %s22_s25 = sshll.u32 %s2569_s24, 4  ;;  %s23_s25 = int_to_ptr.vmem [resolvable:$true] %s22_s25 }
   0x4   :  { %s2511_s26 = scalar_lea.vmem %s23_s25, 8192  ;;  %p2516_p1 = scmp.lt.s32.totalorder %s23_s25, %s23_s25 }
   0x5   :  { %p2512_p0 = scmp.ne.s32.totalorder %s23_s25, %s2511_s26  ;;  %p2517_p2 = scmp.lt.s32.totalorder %s2511_s26, %s2511_s26 }
   0x7   :  { %p2518_p3 = por %p2517_p2, %p2516_p1 }
   0x9   :  { %p2519_p4 = pnand %p2518_p3, %p2512_p0 }
   0xb   :  { %2522 = shalt.err (!%p2519_p4)
}
   0xc   :  { %s2570_s27 = smov 256   ;;  %s2571_s28 = smov 16  }
   0xd   :  { %28 = dma.hbm_to_vmem [thread:$0]  %s2773_s1, 8192, %s23_s25, [#allocation3], %s2570_s27, %s2570_s27, %s2571_s28  }
   0xe   :  { %s2572_s8 = smov [#allocation5]  }
   0xf   :  { %s36_s9 = sshll.u32 %s2572_s8, 4  ;;  %s37_s9 = int_to_ptr.vmem [resolvable:$true] %s36_s9 }
  0x10   :  { %s2531_s10 = scalar_lea.vmem %s37_s9, 16384  ;;  %p2536_p6 = scmp.lt.s32.totalorder %s37_s9, %s37_s9 }
  0x11   :  { %p2532_p5 = scmp.ne.s32.totalorder %s37_s9, %s2531_s10  ;;  %p2537_p7 = scmp.lt.s32.totalorder %s2531_s10, %s2531_s10 }
  0x13   :  { %p2538_p8 = por %p2537_p7, %p2536_p6 }
  0x15   :  { %p2539_p9 = pnand %p2538_p8, %p2532_p5 }
  0x17   :  { %2542 = shalt.err (!%p2539_p9)
}
  0x18   :  { %42 = dma.hbm_to_vmem [thread:$0]  %s2775_s3, 16384, %s37_s9, [#allocation6], %s2570_s27, %s2570_s27, %s2571_s28  }
  0x19   :  { %2563 = dma.done.wait [#allocation3], 8192  }
  0x1a   :  { %2564 = vsyncadd [#allocation3], 4294959104 }
  0x1b   :  { %2565 = dma.done.wait [#allocation6], 16384  }
  0x1c   :  { %2566 = vsyncadd [#allocation6], 4294950912  ;;  %v2183_v0 = vld [vmem:[#allocation2 + $0xe4] ss:$16 sps:$4 sm:$0xff]   ;;  %v2185_v1 = vld [vmem:[#allocation2 + $0xec] ss:$16 sps:$4 sm:$0xff]  }
  0x1d   :  { %468 = vmatprep.subr.bf16.mxu0 %v2183_v0  ;;  %v2187_v2 = vld [vmem:[#allocation2 + $0xe0] ss:$16 sps:$4 sm:$0xff]   ;;  %v2188_v3 = vld [vmem:[#allocation2 + $0xe8] ss:$16 sps:$4 sm:$0xff]   ;;  %511 = vmatprep.subr.bf16.mxu1 %v2185_v1  ;;  %v2189_v4 = vld [vmem:[#allocation2 + $0xc4] ss:$16 sps:$4 sm:$0xff]  }
  0x1e   :  { %469 = vmatpush1.bf16.msra.mxu0 %v2187_v2  ;;  %512 = vmatpush1.bf16.msra.mxu1 %v2188_v3  ;;  %v2191_v5 = vld [vmem:[#allocation2 + $0xcc] ss:$16 sps:$4 sm:$0xff]   ;;  %v2193_v6 = vld [vmem:[#allocation2 + $0xc0] ss:$16 sps:$4 sm:$0xff]   ;;  %v2194_v7 = vld [vmem:[#allocation2 + $0xc8] ss:$16 sps:$4 sm:$0xff]  }
  0x1f   :  { %470 = vmatprep.subr.bf16.mxu0 %v2189_v4  ;;  %513 = vmatprep.subr.bf16.mxu1 %v2191_v5  ;;  %v2195_v8 = vld [vmem:[#allocation2 + $0xa4] ss:$16 sps:$4 sm:$0xff]   ;;  %v2197_v9 = vld [vmem:[#allocation2 + $0xac] ss:$16 sps:$4 sm:$0xff]   ;;  %v2199_v10 = vld [vmem:[#allocation2 + $0xa0] ss:$16 sps:$4 sm:$0xff]  }
  0x20   :  { %v2200_v11 = vld [vmem:[#allocation2 + $0xa8] ss:$16 sps:$4 sm:$0xff]   ;;  %v2201_v12 = vld [vmem:[#allocation2 + $0x84] ss:$16 sps:$4 sm:$0xff]   ;;  %v2203_v13 = vld [vmem:[#allocation2 + $0x8c] ss:$16 sps:$4 sm:$0xff]  }
  0x21   :  { %v2205_v14 = vld [vmem:[#allocation2 + $0x80] ss:$16 sps:$4 sm:$0xff]   ;;  %v2206_v15 = vld [vmem:[#allocation2 + $0x88] ss:$16 sps:$4 sm:$0xff]   ;;  %v2207_v16 = vld [vmem:[#allocation2 + $0x64] ss:$16 sps:$4 sm:$0xff]  }
  0x22   :  { %471 = vmatpush1.bf16.msra.mxu0 %v2193_v6  ;;  %514 = vmatpush1.bf16.msra.mxu1 %v2194_v7  ;;  %v2209_v17 = vld [vmem:[#allocation2 + $0x6c] ss:$16 sps:$4 sm:$0xff]   ;;  %v2211_v18 = vld [vmem:[#allocation2 + $0x60] ss:$16 sps:$4 sm:$0xff]   ;;  %v2212_v19 = vld [vmem:[#allocation2 + $0x68] ss:$16 sps:$4 sm:$0xff]  }
  0x23   :  { %472 = vmatprep.subr.bf16.mxu0 %v2195_v8  ;;  %515 = vmatprep.subr.bf16.mxu1 %v2197_v9  ;;  %v2213_v20 = vld [vmem:[#allocation2 + $0x44] ss:$16 sps:$4 sm:$0xff]   ;;  %v2215_v21 = vld [vmem:[#allocation2 + $0x4c] ss:$16 sps:$4 sm:$0xff]   ;;  %v2217_v22 = vld [vmem:[#allocation2 + $0x40] ss:$16 sps:$4 sm:$0xff]  }
  0x24   :  { %v2218_v23 = vld [vmem:[#allocation2 + $0x48] ss:$16 sps:$4 sm:$0xff]   ;;  %v2219_v24 = vld [vmem:[#allocation2 + $0x24] ss:$16 sps:$4 sm:$0xff]   ;;  %v2221_v25 = vld [vmem:[#allocation2 + $0x2c] ss:$16 sps:$4 sm:$0xff]  }
  0x25   :  { %v2223_v26 = vld [vmem:[#allocation2 + $0x20] ss:$16 sps:$4 sm:$0xff]   ;;  %v2224_v27 = vld [vmem:[#allocation2 + $0x28] ss:$16 sps:$4 sm:$0xff]   ;;  %v2225_v28 = vld [vmem:[#allocation2 + $0x4] ss:$16 sps:$4 sm:$0xff]  }
  0x26   :  { %473 = vmatpush1.bf16.msra.mxu0 %v2199_v10  ;;  %516 = vmatpush1.bf16.msra.mxu1 %v2200_v11  ;;  %v2227_v29 = vld [vmem:[#allocation2 + $0xc] ss:$16 sps:$4 sm:$0xff]   ;;  %v2229_v30 = vld [vmem:[#allocation2] ss:$16 sps:$4 sm:$0xff]   ;;  %v2230_v31 = vld [vmem:[#allocation2 + $0x8] ss:$16 sps:$4 sm:$0xff]  }
  0x27   :  { %474 = vmatprep.subr.bf16.mxu0 %v2201_v12  ;;  %517 = vmatprep.subr.bf16.mxu1 %v2203_v13  ;;  %v2231_v32 = vld [vmem:[#allocation2 + $0x1e4] ss:$16 sps:$4 sm:$0xff]   ;;  %v2233_v33 = vld [vmem:[#allocation2 + $0x1ec] ss:$16 sps:$4 sm:$0xff]   ;;  %v2235_v34 = vld [vmem:[#allocation2 + $0x1e0] ss:$16 sps:$4 sm:$0xff]  }
  0x28   :  { %v2236_v35 = vld [vmem:[#allocation2 + $0x1e8] ss:$16 sps:$4 sm:$0xff]   ;;  %v2237_v36 = vld [vmem:[#allocation2 + $0x1c4] ss:$16 sps:$4 sm:$0xff]   ;;  %v2239_v37 = vld [vmem:[#allocation2 + $0x1cc] ss:$16 sps:$4 sm:$0xff]  }
  0x29   :  { %v2241_v38 = vld [vmem:[#allocation2 + $0x1c0] ss:$16 sps:$4 sm:$0xff]   ;;  %v2242_v39 = vld [vmem:[#allocation2 + $0x1c8] ss:$16 sps:$4 sm:$0xff]   ;;  %v2243_v40 = vld [vmem:[#allocation2 + $0x1a4] ss:$16 sps:$4 sm:$0xff]  }
  0x2a   :  { %475 = vmatpush1.bf16.msra.mxu0 %v2205_v14  ;;  %518 = vmatpush1.bf16.msra.mxu1 %v2206_v15  ;;  %v2245_v41 = vld [vmem:[#allocation2 + $0x1ac] ss:$16 sps:$4 sm:$0xff]   ;;  %v2247_v42 = vld [vmem:[#allocation2 + $0x1a0] ss:$16 sps:$4 sm:$0xff]   ;;  %v2248_v43 = vld [vmem:[#allocation2 + $0x1a8] ss:$16 sps:$4 sm:$0xff]  }
  0x2b   :  { %476 = vmatprep.subr.bf16.mxu0 %v2207_v16  ;;  %519 = vmatprep.subr.bf16.mxu1 %v2209_v17  ;;  %v2249_v44 = vld [vmem:[#allocation2 + $0x184] ss:$16 sps:$4 sm:$0xff]   ;;  %v2251_v45 = vld [vmem:[#allocation2 + $0x18c] ss:$16 sps:$4 sm:$0xff]   ;;  %v2253_v47 = vld [vmem:[#allocation2 + $0x180] ss:$16 sps:$4 sm:$0xff]  }
  0x2c   :  { %v57_v46 = vld [vmem:[%s2772_s0 + $0x8] sm:$0xff]  ;;  %v59_v49 = vld [vmem:[%s2772_s0 + $0x18] sm:$0xff]  ;;  %v2255_v50 = vld [vmem:[#allocation2 + $0x164] ss:$16 sps:$4 sm:$0xff]   ;;  %s2573_s8 = smov [#allocation7]  }
  0x2d   :  { %v2254_v48 = vld [vmem:[#allocation2 + $0x188] ss:$16 sps:$4 sm:$0xff]   ;;  %v61_v51 = vpack.c.bf16 %v59_v49, %v57_v46  ;;  %v2257_v52 = vld [vmem:[#allocation2 + $0x16c] ss:$16 sps:$4 sm:$0xff]   ;;  %v2259_v53 = vld [vmem:[#allocation2 + $0x160] ss:$16 sps:$4 sm:$0xff]  }
  0x2e   :  { %477 = vmatpush1.bf16.msra.mxu0 %v2211_v18  ;;  %520 = vmatpush1.bf16.msra.mxu1 %v2212_v19  ;;  %v2260_v54 = vld [vmem:[#allocation2 + $0x168] ss:$16 sps:$4 sm:$0xff]   ;;  %v2261_v55 = vld [vmem:[#allocation2 + $0x144] ss:$16 sps:$4 sm:$0xff]   ;;  %v2263_v56 = vld [vmem:[#allocation2 + $0x14c] ss:$16 sps:$4 sm:$0xff]  }
  0x2f   :  { %478 = vmatprep.subr.bf16.mxu0 %v2213_v20  ;;  %521 = vmatprep.subr.bf16.mxu1 %v2215_v21  ;;  %v2265_v57 = vld [vmem:[#allocation2 + $0x140] ss:$16 sps:$4 sm:$0xff]   ;;  %v2266_v58 = vld [vmem:[#allocation2 + $0x148] ss:$16 sps:$4 sm:$0xff]   ;;  %v2267_v59 = vld [vmem:[#allocation2 + $0x124] ss:$16 sps:$4 sm:$0xff]  }
  0x30   :  { %500 = vmatprep.mubr.bf16.mxu0 %v61_v51  ;;  %543 = vmatprep.mubr.bf16.mxu1 %v61_v51  ;;  %v2269_v60 = vld [vmem:[#allocation2 + $0x12c] ss:$16 sps:$4 sm:$0xff]   ;;  %v2271_v61 = vld [vmem:[#allocation2 + $0x120] ss:$16 sps:$4 sm:$0xff]   ;;  %v2272_v62 = vld [vmem:[#allocation2 + $0x128] ss:$16 sps:$4 sm:$0xff]  }
  0x31   :  { %v2273_v63 = vld [vmem:[#allocation2 + $0x104] ss:$16 sps:$4 sm:$0xff]   ;;  %v2275_v0 = vld [vmem:[#allocation2 + $0x10c] ss:$16 sps:$4 sm:$0xff]   ;;  %v2277_v1 = vld [vmem:[#allocation2 + $0x100] ss:$16 sps:$4 sm:$0xff]  }
  0x32   :  { %479 = vmatpush1.bf16.msra.mxu0 %v2217_v22  ;;  %522 = vmatpush1.bf16.msra.mxu1 %v2218_v23  ;;  %v2278_v2 = vld [vmem:[#allocation2 + $0x108] ss:$16 sps:$4 sm:$0xff]   ;;  %v56_v3 = vld [vmem:[%s2772_s0] sm:$0xff]  ;;  %v58_v4 = vld [vmem:[%s2772_s0 + $0x10] sm:$0xff]  ;;  %s1894_s9 = sshll.u32 %s2573_s8, 4  ;;  %s1895_s9 = int_to_ptr.vmem [resolvable:$true] %s1894_s9 }
  0x33   :  { %480 = vmatprep.subr.bf16.mxu0 %v2219_v24  ;;  %523 = vmatprep.subr.bf16.mxu1 %v2221_v25  ;;  %v2281_v5 = vld [vmem:[#allocation5 + $0xe4] ss:$16 sps:$4 sm:$0xff]   ;;  %v60_v7 = vpack.c.bf16 %v58_v4, %v56_v3  ;;  %v2279_v8 = vld [vmem:[#allocation5 + $0xe0] ss:$16 sps:$4 sm:$0xff]   ;;  %p2548_p11 = scmp.lt.s32.totalorder %s1895_s9, %s1895_s9 }
  0x34   :  { %v2284_v6 = vld [vmem:[#allocation5 + $0x2e4] ss:$16 sps:$4 sm:$0xff]   ;;  %v2282_v9 = vld [vmem:[#allocation5 + $0x2e0] ss:$16 sps:$4 sm:$0xff]  }
  0x35   :  { %v2287_v10 = vld [vmem:[#allocation5 + $0xc4] ss:$16 sps:$4 sm:$0xff]   ;;  %v2285_v12 = vld [vmem:[#allocation5 + $0xc0] ss:$16 sps:$4 sm:$0xff]  }
  0x36   :  { %481 = vmatpush1.bf16.msra.mxu0 %v2223_v26  ;;  %524 = vmatpush1.bf16.msra.mxu1 %v2224_v27  ;;  %v2290_v11 = vld [vmem:[#allocation5 + $0x2c4] ss:$16 sps:$4 sm:$0xff]   ;;  %v2288_v13 = vld [vmem:[#allocation5 + $0x2c0] ss:$16 sps:$4 sm:$0xff]  }
  0x37   :  { %482 = vmatprep.subr.bf16.mxu0 %v2225_v28  ;;  %525 = vmatprep.subr.bf16.mxu1 %v2227_v29  ;;  %v2293_v14 = vld [vmem:[#allocation5 + $0xa4] ss:$16 sps:$4 sm:$0xff]   ;;  %v2291_v16 = vld [vmem:[#allocation5 + $0xa0] ss:$16 sps:$4 sm:$0xff]  }
  0x38   :  { %v2296_v15 = vld [vmem:[#allocation5 + $0x2a4] ss:$16 sps:$4 sm:$0xff]   ;;  %v2294_v17 = vld [vmem:[#allocation5 + $0x2a0] ss:$16 sps:$4 sm:$0xff]  }
  0x39   :  { %v2299_v18 = vld [vmem:[#allocation5 + $0x84] ss:$16 sps:$4 sm:$0xff]   ;;  %v2297_v20 = vld [vmem:[#allocation5 + $0x80] ss:$16 sps:$4 sm:$0xff]  }
  0x3a   :  { %483 = vmatpush1.bf16.msra.mxu0 %v2229_v30  ;;  %526 = vmatpush1.bf16.msra.mxu1 %v2230_v31  ;;  %v2302_v19 = vld [vmem:[#allocation5 + $0x284] ss:$16 sps:$4 sm:$0xff]   ;;  %v2300_v21 = vld [vmem:[#allocation5 + $0x280] ss:$16 sps:$4 sm:$0xff]  }
  0x3b   :  { %484 = vmatprep.subr.bf16.mxu0 %v2231_v32  ;;  %527 = vmatprep.subr.bf16.mxu1 %v2233_v33  ;;  %v2305_v22 = vld [vmem:[#allocation5 + $0x64] ss:$16 sps:$4 sm:$0xff]   ;;  %v2303_v24 = vld [vmem:[#allocation5 + $0x60] ss:$16 sps:$4 sm:$0xff]  }
  0x3c   :  { %v2308_v23 = vld [vmem:[#allocation5 + $0x264] ss:$16 sps:$4 sm:$0xff]   ;;  %v2306_v25 = vld [vmem:[#allocation5 + $0x260] ss:$16 sps:$4 sm:$0xff]  }
  0x3d   :  { %v2311_v26 = vld [vmem:[#allocation5 + $0x44] ss:$16 sps:$4 sm:$0xff]   ;;  %v2309_v28 = vld [vmem:[#allocation5 + $0x40] ss:$16 sps:$4 sm:$0xff]  }
  0x3e   :  { %485 = vmatpush2.bf16.msra.mxu0 %v2235_v34  ;;  %528 = vmatpush2.bf16.msra.mxu1 %v2236_v35  ;;  %v2314_v27 = vld [vmem:[#allocation5 + $0x244] ss:$16 sps:$4 sm:$0xff]   ;;  %v2312_v29 = vld [vmem:[#allocation5 + $0x240] ss:$16 sps:$4 sm:$0xff]  }
  0x3f   :  { %486 = vmatprep.subr.bf16.mxu0 %v2237_v36  ;;  %529 = vmatprep.subr.bf16.mxu1 %v2239_v37  ;;  %v2317_v30 = vld [vmem:[#allocation5 + $0x24] ss:$16 sps:$4 sm:$0xff]   ;;  %v2315_v32 = vld [vmem:[#allocation5 + $0x20] ss:$16 sps:$4 sm:$0xff]  }
  0x40   :  { %v2320_v31 = vld [vmem:[#allocation5 + $0x224] ss:$16 sps:$4 sm:$0xff]   ;;  %v2318_v33 = vld [vmem:[#allocation5 + $0x220] ss:$16 sps:$4 sm:$0xff]  }
  0x41   :  { %v2323_v34 = vld [vmem:[#allocation5 + $0x4] ss:$16 sps:$4 sm:$0xff]   ;;  %v2321_v36 = vld [vmem:[#allocation5] ss:$16 sps:$4 sm:$0xff]  }
  0x42   :  { %487 = vmatpush2.bf16.msra.mxu0 %v2241_v38  ;;  %530 = vmatpush2.bf16.msra.mxu1 %v2242_v39  ;;  %v2326_v35 = vld [vmem:[#allocation5 + $0x204] ss:$16 sps:$4 sm:$0xff]   ;;  %v2324_v37 = vld [vmem:[#allocation5 + $0x200] ss:$16 sps:$4 sm:$0xff]  }
  0x43   :  { %488 = vmatprep.subr.bf16.mxu0 %v2243_v40  ;;  %531 = vmatprep.subr.bf16.mxu1 %v2245_v41  ;;  %v2329_v38 = vld [vmem:[#allocation5 + $0x1e4] ss:$16 sps:$4 sm:$0xff]   ;;  %v2327_v40 = vld [vmem:[#allocation5 + $0x1e0] ss:$16 sps:$4 sm:$0xff]  }
  0x44   :  { %v2332_v39 = vld [vmem:[#allocation5 + $0x3e4] ss:$16 sps:$4 sm:$0xff]   ;;  %v2330_v41 = vld [vmem:[#allocation5 + $0x3e0] ss:$16 sps:$4 sm:$0xff]  }
  0x45   :  { %v2341_v46 = vld [vmem:[#allocation5 + $0x1a4] ss:$16 sps:$4 sm:$0xff]   ;;  %v2342_v49 = vld [vmem:[#allocation5 + $0x3a0] ss:$16 sps:$4 sm:$0xff]  }
  0x46   :  { %489 = vmatpush2.bf16.msra.mxu0 %v2247_v42  ;;  %532 = vmatpush2.bf16.msra.mxu1 %v2248_v43  ;;  %v2335_v42 = vld [vmem:[#allocation5 + $0x1c4] ss:$16 sps:$4 sm:$0xff]   ;;  %v2369_v4 = vld [vmem:[#allocation5 + $0x100] ss:$16 sps:$4 sm:$0xff]  }
  0x47   :  { %490 = vmatprep.subr.bf16.mxu0 %v2249_v44  ;;  %533 = vmatprep.subr.bf16.mxu1 %v2251_v45  ;;  %v2338_v43 = vld [vmem:[#allocation5 + $0x3c4] ss:$16 sps:$4 sm:$0xff]   ;;  %v2333_v44 = vld [vmem:[#allocation5 + $0x1c0] ss:$16 sps:$4 sm:$0xff]  }
  0x48   :  { %v2336_v45 = vld [vmem:[#allocation5 + $0x3c0] ss:$16 sps:$4 sm:$0xff]   ;;  %v2350_v51 = vld [vmem:[#allocation5 + $0x384] ss:$16 sps:$4 sm:$0xff]  }
  0x49   :  { %v2374_v3 = vld [vmem:[#allocation5 + $0x304] ss:$16 sps:$4 sm:$0xff]  }
  0x4a   :  { %491 = vmatpush2.bf16.msra.mxu0 %v2253_v47  ;;  %534 = vmatpush2.bf16.msra.mxu1 %v2254_v48  ;;  %v2344_v47 = vld [vmem:[#allocation5 + $0x3a4] ss:$16 sps:$4 sm:$0xff]   ;;  %v2339_v48 = vld [vmem:[#allocation5 + $0x1a0] ss:$16 sps:$4 sm:$0xff]  }
  0x4b   :  { %492 = vmatprep.subr.bf16.mxu0 %v2255_v50  ;;  %535 = vmatprep.subr.bf16.mxu1 %v2257_v52  ;;  %v2347_v50 = vld [vmem:[#allocation5 + $0x184] ss:$16 sps:$4 sm:$0xff]   ;;  %v2345_v52 = vld [vmem:[#allocation5 + $0x180] ss:$16 sps:$4 sm:$0xff]  }
  0x4e   :  { %493 = vmatpush2.bf16.msra.mxu0 %v2259_v53  ;;  %536 = vmatpush2.bf16.msra.mxu1 %v2260_v54  ;;  %v2348_v53 = vld [vmem:[#allocation5 + $0x380] ss:$16 sps:$4 sm:$0xff]   ;;  %v2353_v54 = vld [vmem:[#allocation5 + $0x164] ss:$16 sps:$4 sm:$0xff]  }
  0x4f   :  { %494 = vmatprep.subr.bf16.mxu0 %v2261_v55  ;;  %537 = vmatprep.subr.bf16.mxu1 %v2263_v56  ;;  %v2356_v55 = vld [vmem:[#allocation5 + $0x364] ss:$16 sps:$4 sm:$0xff]   ;;  %v2351_v56 = vld [vmem:[#allocation5 + $0x160] ss:$16 sps:$4 sm:$0xff]  }
  0x52   :  { %495 = vmatpush2.bf16.msra.mxu0 %v2265_v57  ;;  %538 = vmatpush2.bf16.msra.mxu1 %v2266_v58  ;;  %v2354_v57 = vld [vmem:[#allocation5 + $0x360] ss:$16 sps:$4 sm:$0xff]   ;;  %v2359_v58 = vld [vmem:[#allocation5 + $0x144] ss:$16 sps:$4 sm:$0xff]  }
  0x53   :  { %496 = vmatprep.subr.bf16.mxu0 %v2267_v59  ;;  %539 = vmatprep.subr.bf16.mxu1 %v2269_v60  ;;  %v2362_v59 = vld [vmem:[#allocation5 + $0x344] ss:$16 sps:$4 sm:$0xff]   ;;  %v2357_v60 = vld [vmem:[#allocation5 + $0x140] ss:$16 sps:$4 sm:$0xff]  }
  0x56   :  { %497 = vmatpush2.bf16.msra.mxu0 %v2271_v61  ;;  %540 = vmatpush2.bf16.msra.mxu1 %v2272_v62  ;;  %v2360_v61 = vld [vmem:[#allocation5 + $0x340] ss:$16 sps:$4 sm:$0xff]   ;;  %v2365_v62 = vld [vmem:[#allocation5 + $0x124] ss:$16 sps:$4 sm:$0xff]  }
  0x57   :  { %498 = vmatprep.subr.bf16.mxu0 %v2273_v63  ;;  %541 = vmatprep.subr.bf16.mxu1 %v2275_v0  ;;  %v2368_v63 = vld [vmem:[#allocation5 + $0x324] ss:$16 sps:$4 sm:$0xff]   ;;  %v2363_v0 = vld [vmem:[#allocation5 + $0x120] ss:$16 sps:$4 sm:$0xff]  }
  0x5a   :  { %499 = vmatpush2.bf16.msra.mxu0 %v2277_v1  ;;  %542 = vmatpush2.bf16.msra.mxu1 %v2278_v2  ;;  %v2366_v1 = vld [vmem:[#allocation5 + $0x320] ss:$16 sps:$4 sm:$0xff]   ;;  %v2371_v2 = vld [vmem:[#allocation5 + $0x104] ss:$16 sps:$4 sm:$0xff]  }
  0x5b   :  { %1356 = vmatprep.subr.bf16.mxu0 %v2281_v5  ;;  %1399 = vmatprep.subr.bf16.mxu1 %v2284_v6  ;;  %v2372_v5 = vld [vmem:[#allocation5 + $0x300] ss:$16 sps:$4 sm:$0xff]   ;;  %v2377_v6 = vld [vmem:[#allocation5 + $0xec] ss:$16 sps:$4 sm:$0xff]  }
  0x5d   :  { %501 = vmatmul.mubr.bf16.vlgmr.msra.gmra.mxu0 %v60_v7  ;;  %544 = vmatmul.mubr.bf16.vlgmr.msra.gmra.mxu1 %v60_v7  ;;  %v2380_v7 = vld [vmem:[#allocation5 + $0x2ec] ss:$16 sps:$4 sm:$0xff]  }
  0x5e   :  { %1357 = vmatpush1.bf16.msra.mxu0 %v2279_v8  ;;  %1400 = vmatpush1.bf16.msra.mxu1 %v2282_v9  ;;  %v128_v8 = vlaneseq }
  0x5f   :  { %1358 = vmatprep.subr.bf16.mxu0 %v2287_v10  ;;  %1401 = vmatprep.subr.bf16.mxu1 %v2290_v11 }
  0x60   :  { %v2634_v9 = vshrl.u32 %v128_v8, 7  ;;  %v2414_v8 = vld [vmem:[#allocation5 + $0x228] ss:$16 sps:$4 sm:$0xff]  }
  0x62   :  { %1359 = vmatpush1.bf16.msra.mxu0 %v2285_v12  ;;  %1402 = vmatpush1.bf16.msra.mxu1 %v2288_v13  ;;  %v134_v10 = vsub.s32 1, %v2634_v9  ;;  %v142_v11 = vsub.s32 3, %v2634_v9  ;;  %v130_v12 = vsub.s32 0, %v2634_v9  ;;  %v138_v13 = vsub.s32 2, %v2634_v9 }
  0x63   :  { %1360 = vmatprep.subr.bf16.mxu0 %v2293_v14  ;;  %1403 = vmatprep.subr.bf16.mxu1 %v2296_v15  ;;  %v126_v14 = vld [vmem:[%s2774_s2] sm:$0xf] }
  0x66   :  { %1361 = vmatpush1.bf16.msra.mxu0 %v2291_v16  ;;  %1404 = vmatpush1.bf16.msra.mxu1 %v2294_v17  ;;  %v135_v17 = vrot.slane %v126_v14, %v134_v10 }
  0x67   :  { %1362 = vmatprep.subr.bf16.mxu0 %v2299_v18  ;;  %1405 = vmatprep.subr.bf16.mxu1 %v2302_v19  ;;  %v143_v18 = vrot.slane %v126_v14, %v142_v11  ;;  %v131_v19 = vrot.slane %v126_v14, %v130_v12 }
  0x6a   :  { %1363 = vmatpush1.bf16.msra.mxu0 %v2297_v20  ;;  %1406 = vmatpush1.bf16.msra.mxu1 %v2300_v21  ;;  %v139_v20 = vrot.slane %v126_v14, %v138_v13  ;;  %v2419_v14 = vld [vmem:[#allocation5 + $0xc] ss:$16 sps:$4 sm:$0xff]  }
  0x6b   :  { %1364 = vmatprep.subr.bf16.mxu0 %v2305_v22  ;;  %1407 = vmatprep.subr.bf16.mxu1 %v2308_v23 }
  0x6e   :  { %1365 = vmatpush1.bf16.msra.mxu0 %v2303_v24  ;;  %1408 = vmatpush1.bf16.msra.mxu1 %v2306_v25 }
  0x6f   :  { %1366 = vmatprep.subr.bf16.mxu0 %v2311_v26  ;;  %1409 = vmatprep.subr.bf16.mxu1 %v2314_v27 }
  0x72   :  { %1367 = vmatpush1.bf16.msra.mxu0 %v2309_v28  ;;  %1410 = vmatpush1.bf16.msra.mxu1 %v2312_v29 }
  0x73   :  { %1368 = vmatprep.subr.bf16.mxu0 %v2317_v30  ;;  %1411 = vmatprep.subr.bf16.mxu1 %v2320_v31 }
  0x76   :  { %1369 = vmatpush1.bf16.msra.mxu0 %v2315_v32  ;;  %1412 = vmatpush1.bf16.msra.mxu1 %v2318_v33 }
  0x77   :  { %1370 = vmatprep.subr.bf16.mxu0 %v2323_v34  ;;  %1413 = vmatprep.subr.bf16.mxu1 %v2326_v35 }
  0x7a   :  { %1371 = vmatpush1.bf16.msra.mxu0 %v2321_v36  ;;  %1414 = vmatpush1.bf16.msra.mxu1 %v2324_v37 }
  0x7b   :  { %1372 = vmatprep.subr.bf16.mxu0 %v2329_v38  ;;  %1415 = vmatprep.subr.bf16.mxu1 %v2332_v39 }
  0x7e   :  { %1373 = vmatpush2.bf16.msra.mxu0 %v2327_v40  ;;  %1416 = vmatpush2.bf16.msra.mxu1 %v2330_v41 }
  0x7f   :  { %1374 = vmatprep.subr.bf16.mxu0 %v2335_v42  ;;  %1417 = vmatprep.subr.bf16.mxu1 %v2338_v43 }
  0x82   :  { %1375 = vmatpush2.bf16.msra.mxu0 %v2333_v44  ;;  %1418 = vmatpush2.bf16.msra.mxu1 %v2336_v45  ;;  %v2375_v45 = vld [vmem:[#allocation5 + $0xe8] ss:$16 sps:$4 sm:$0xff]  }
  0x83   :  { %1376 = vmatprep.subr.bf16.mxu0 %v2341_v46  ;;  %1419 = vmatprep.subr.bf16.mxu1 %v2344_v47  ;;  %v2378_v46 = vld [vmem:[#allocation5 + $0x2e8] ss:$16 sps:$4 sm:$0xff]  }
  0x86   :  { %1377 = vmatpush2.bf16.msra.mxu0 %v2339_v48  ;;  %1420 = vmatpush2.bf16.msra.mxu1 %v2342_v49  ;;  %v2383_v49 = vld [vmem:[#allocation5 + $0xcc] ss:$16 sps:$4 sm:$0xff]  }
  0x87   :  { %1378 = vmatprep.subr.bf16.mxu0 %v2347_v50  ;;  %1421 = vmatprep.subr.bf16.mxu1 %v2350_v51  ;;  %v2386_v50 = vld [vmem:[#allocation5 + $0x2cc] ss:$16 sps:$4 sm:$0xff]   ;;  %v2381_v51 = vld [vmem:[#allocation5 + $0xc8] ss:$16 sps:$4 sm:$0xff]  }
  0x8a   :  { %1379 = vmatpush2.bf16.msra.mxu0 %v2345_v52  ;;  %1422 = vmatpush2.bf16.msra.mxu1 %v2348_v53  ;;  %v2384_v52 = vld [vmem:[#allocation5 + $0x2c8] ss:$16 sps:$4 sm:$0xff]   ;;  %v2389_v53 = vld [vmem:[#allocation5 + $0xac] ss:$16 sps:$4 sm:$0xff]  }
  0x8b   :  { %1380 = vmatprep.subr.bf16.mxu0 %v2353_v54  ;;  %1423 = vmatprep.subr.bf16.mxu1 %v2356_v55  ;;  %v2392_v54 = vld [vmem:[#allocation5 + $0x2ac] ss:$16 sps:$4 sm:$0xff]   ;;  %v2387_v55 = vld [vmem:[#allocation5 + $0xa8] ss:$16 sps:$4 sm:$0xff]  }
  0x8e   :  { %1381 = vmatpush2.bf16.msra.mxu0 %v2351_v56  ;;  %1424 = vmatpush2.bf16.msra.mxu1 %v2354_v57  ;;  %v2390_v56 = vld [vmem:[#allocation5 + $0x2a8] ss:$16 sps:$4 sm:$0xff]   ;;  %v2395_v57 = vld [vmem:[#allocation5 + $0x8c] ss:$16 sps:$4 sm:$0xff]  }
  0x8f   :  { %1382 = vmatprep.subr.bf16.mxu0 %v2359_v58  ;;  %1425 = vmatprep.subr.bf16.mxu1 %v2362_v59  ;;  %v2398_v58 = vld [vmem:[#allocation5 + $0x28c] ss:$16 sps:$4 sm:$0xff]   ;;  %v2393_v59 = vld [vmem:[#allocation5 + $0x88] ss:$16 sps:$4 sm:$0xff]  }
  0x92   :  { %1383 = vmatpush2.bf16.msra.mxu0 %v2357_v60  ;;  %1426 = vmatpush2.bf16.msra.mxu1 %v2360_v61  ;;  %v2396_v60 = vld [vmem:[#allocation5 + $0x288] ss:$16 sps:$4 sm:$0xff]   ;;  %v2401_v61 = vld [vmem:[#allocation5 + $0x6c] ss:$16 sps:$4 sm:$0xff]  }
  0x93   :  { %1384 = vmatprep.subr.bf16.mxu0 %v2365_v62  ;;  %1427 = vmatprep.subr.bf16.mxu1 %v2368_v63  ;;  %v2404_v62 = vld [vmem:[#allocation5 + $0x26c] ss:$16 sps:$4 sm:$0xff]   ;;  %v2399_v63 = vld [vmem:[#allocation5 + $0x68] ss:$16 sps:$4 sm:$0xff]  }
  0x96   :  { %1385 = vmatpush2.bf16.msra.mxu0 %v2363_v0  ;;  %1428 = vmatpush2.bf16.msra.mxu1 %v2366_v1  ;;  %v2402_v0 = vld [vmem:[#allocation5 + $0x268] ss:$16 sps:$4 sm:$0xff]   ;;  %v2407_v1 = vld [vmem:[#allocation5 + $0x4c] ss:$16 sps:$4 sm:$0xff]  }
  0x97   :  { %1386 = vmatprep.subr.bf16.mxu0 %v2371_v2  ;;  %1429 = vmatprep.subr.bf16.mxu1 %v2374_v3  ;;  %v2410_v2 = vld [vmem:[#allocation5 + $0x24c] ss:$16 sps:$4 sm:$0xff]   ;;  %v2405_v3 = vld [vmem:[#allocation5 + $0x48] ss:$16 sps:$4 sm:$0xff]  }
  0x9a   :  { %1387 = vmatpush2.bf16.msra.mxu0 %v2369_v4  ;;  %1430 = vmatpush2.bf16.msra.mxu1 %v2372_v5  ;;  %v2408_v4 = vld [vmem:[#allocation5 + $0x248] ss:$16 sps:$4 sm:$0xff]   ;;  %v2413_v5 = vld [vmem:[#allocation5 + $0x2c] ss:$16 sps:$4 sm:$0xff]  }
  0x9b   :  { %1442 = vmatprep.subr.bf16.mxu0 %v2377_v6  ;;  %1485 = vmatprep.subr.bf16.mxu1 %v2380_v7  ;;  %v2416_v6 = vld [vmem:[#allocation5 + $0x22c] ss:$16 sps:$4 sm:$0xff]   ;;  %v2411_v7 = vld [vmem:[#allocation5 + $0x28] ss:$16 sps:$4 sm:$0xff]  }
 0x11d   :  { %v502_v15 = vpop.f32.mrf.mxu0  ;;  %v545_v16 = vpop.f32.mrf.mxu1 }
 0x11e   :  { %v503_v29 = vadd.f32 %v502_v15, %v131_v19  ;;  %v546_v30 = vadd.f32 %v545_v16, %v139_v20  ;;  %v2422_v15 = vld [vmem:[#allocation5 + $0x20c] ss:$16 sps:$4 sm:$0xff]   ;;  %v2417_v16 = vld [vmem:[#allocation5 + $0x8] ss:$16 sps:$4 sm:$0xff]  }
 0x11f   :  { %v504_v21 = vpop.f32.mrf.mxu0  ;;  %v547_v22 = vpop.f32.mrf.mxu1 }
 0x120   :  { %v505_v25 = vadd.f32 %v504_v21, %v135_v17  ;;  %v548_v26 = vadd.f32 %v547_v22, %v143_v18  ;;  %v554_v41 = vmax.f32 %v503_v29, 0.0  ;;  %v556_v42 = vmax.f32 %v546_v30, 0.0  ;;  %v2426_v21 = vld [vmem:[#allocation5 + $0x3e8] ss:$16 sps:$4 sm:$0xff]   ;;  %v2431_v22 = vld [vmem:[#allocation5 + $0x1cc] ss:$16 sps:$4 sm:$0xff]  }
 0x121   :  { %v506_v23 = vpop.f32.mrf.mxu0  ;;  %v549_v24 = vpop.f32.mrf.mxu1  ;;  %v2438_v29 = vld [vmem:[#allocation5 + $0x3a8] ss:$16 sps:$4 sm:$0xff]   ;;  %v2443_v30 = vld [vmem:[#allocation5 + $0x18c] ss:$16 sps:$4 sm:$0xff]  }
 0x122   :  { %v507_v27 = vadd.f32 %v506_v23, %v131_v19  ;;  %v550_v28 = vadd.f32 %v549_v24, %v139_v20  ;;  %v555_v37 = vmax.f32 %v505_v25, 0.0  ;;  %v557_v38 = vmax.f32 %v548_v26, 0.0  ;;  %v2428_v19 = vld [vmem:[#allocation5 + $0x3ec] ss:$16 sps:$4 sm:$0xff]   ;;  %v2423_v20 = vld [vmem:[#allocation5 + $0x1e8] ss:$16 sps:$4 sm:$0xff]  }
 0x123   :  { %v508_v31 = vpop.f32.mrf.mxu0  ;;  %v551_v32 = vpop.f32.mrf.mxu1  ;;  %v2434_v23 = vld [vmem:[#allocation5 + $0x3cc] ss:$16 sps:$4 sm:$0xff]   ;;  %v2429_v24 = vld [vmem:[#allocation5 + $0x1c8] ss:$16 sps:$4 sm:$0xff]  }
 0x124   :  { %v509_v33 = vadd.f32 %v508_v31, %v135_v17  ;;  %v552_v34 = vadd.f32 %v551_v32, %v143_v18  ;;  %v558_v35 = vmax.f32 %v507_v27, 0.0  ;;  %v560_v36 = vmax.f32 %v550_v28, 0.0  ;;  %v2420_v17 = vld [vmem:[#allocation5 + $0x208] ss:$16 sps:$4 sm:$0xff]   ;;  %v2425_v18 = vld [vmem:[#allocation5 + $0x1ec] ss:$16 sps:$4 sm:$0xff]  }
 0x125   :  { %v2432_v25 = vld [vmem:[#allocation5 + $0x3c8] ss:$16 sps:$4 sm:$0xff]   ;;  %v2437_v26 = vld [vmem:[#allocation5 + $0x1ac] ss:$16 sps:$4 sm:$0xff]  }
 0x126   :  { %v559_v39 = vmax.f32 %v509_v33, 0.0  ;;  %v561_v40 = vmax.f32 %v552_v34, 0.0  ;;  %v2651_v47 = vpack.c.bf16 %v558_v35, %v554_v41  ;;  %v2653_v48 = vpack.c.bf16 %v560_v36, %v556_v42  ;;  %v2440_v27 = vld [vmem:[#allocation5 + $0x3ac] ss:$16 sps:$4 sm:$0xff]   ;;  %v2435_v28 = vld [vmem:[#allocation5 + $0x1a8] ss:$16 sps:$4 sm:$0xff]  }
 0x127   :  { %v2446_v31 = vld [vmem:[#allocation5 + $0x38c] ss:$16 sps:$4 sm:$0xff]   ;;  %v2441_v32 = vld [vmem:[#allocation5 + $0x188] ss:$16 sps:$4 sm:$0xff]  }
 0x128   :  { %v563_v43 = vpack.c.bf16 %v559_v39, %v555_v37  ;;  %v565_v44 = vpack.c.bf16 %v561_v40, %v557_v38  ;;  %v2444_v33 = vld [vmem:[#allocation5 + $0x388] ss:$16 sps:$4 sm:$0xff]   ;;  %v2449_v34 = vld [vmem:[#allocation5 + $0x16c] ss:$16 sps:$4 sm:$0xff]  }
 0x129   :  { %v2452_v35 = vld [vmem:[#allocation5 + $0x36c] ss:$16 sps:$4 sm:$0xff]   ;;  %v2447_v36 = vld [vmem:[#allocation5 + $0x168] ss:$16 sps:$4 sm:$0xff]  }
 0x12a   :  { %1388 = vmatprep.mubr.bf16.mxu0 %v563_v43  ;;  %1431 = vmatprep.mubr.bf16.mxu1 %v565_v44  ;;  %v2450_v37 = vld [vmem:[#allocation5 + $0x368] ss:$16 sps:$4 sm:$0xff]   ;;  %v2455_v38 = vld [vmem:[#allocation5 + $0x14c] ss:$16 sps:$4 sm:$0xff]  }
 0x12b   :  { %1389 = vmatmul.mubr.bf16.vlgmr.msra.gmra.mxu0 %v2651_v47  ;;  %1432 = vmatmul.mubr.bf16.vlgmr.msra.gmra.mxu1 %v2653_v48  ;;  %v2458_v39 = vld [vmem:[#allocation5 + $0x34c] ss:$16 sps:$4 sm:$0xff]   ;;  %v2453_v40 = vld [vmem:[#allocation5 + $0x148] ss:$16 sps:$4 sm:$0xff]  }
 0x12c   :  { %1443 = vmatpush1.bf16.msra.mxu0 %v2375_v45  ;;  %1486 = vmatpush1.bf16.msra.mxu1 %v2378_v46  ;;  %v2456_v41 = vld [vmem:[#allocation5 + $0x348] ss:$16 sps:$4 sm:$0xff]   ;;  %v2461_v42 = vld [vmem:[#allocation5 + $0x12c] ss:$16 sps:$4 sm:$0xff]  }
 0x12d   :  { %1474 = vmatprep.mubr.bf16.mxu0 %v563_v43  ;;  %1517 = vmatprep.mubr.bf16.mxu1 %v565_v44  ;;  %v2464_v43 = vld [vmem:[#allocation5 + $0x32c] ss:$16 sps:$4 sm:$0xff]   ;;  %v2459_v44 = vld [vmem:[#allocation5 + $0x128] ss:$16 sps:$4 sm:$0xff]  }
 0x12e   :  { %1444 = vmatprep.subr.bf16.mxu0 %v2383_v49  ;;  %1487 = vmatprep.subr.bf16.mxu1 %v2386_v50  ;;  %v2462_v45 = vld [vmem:[#allocation5 + $0x328] ss:$16 sps:$4 sm:$0xff]   ;;  %v2467_v46 = vld [vmem:[#allocation5 + $0x10c] ss:$16 sps:$4 sm:$0xff]  }
 0x12f   :  { %v2470_v49 = vld [vmem:[#allocation5 + $0x30c] ss:$16 sps:$4 sm:$0xff]   ;;  %v2465_v50 = vld [vmem:[#allocation5 + $0x108] ss:$16 sps:$4 sm:$0xff]  }
 0x130   :  { %1445 = vmatpush1.bf16.msra.mxu0 %v2381_v51  ;;  %1488 = vmatpush1.bf16.msra.mxu1 %v2384_v52  ;;  %v2468_v51 = vld [vmem:[#allocation5 + $0x308] ss:$16 sps:$4 sm:$0xff]  }
 0x131   :  { %1446 = vmatprep.subr.bf16.mxu0 %v2389_v53  ;;  %1489 = vmatprep.subr.bf16.mxu1 %v2392_v54  ;;  %v2471_v52 = vld [vmem:[%s2777_s5 + $0x78] sm:$0xff]   ;;  %v2473_v54 = vld [vmem:[%s2777_s5 + $0x70] sm:$0xff]  }
 0x132   :  { %v2472_v53 = vld [vmem:[%s2777_s5 + $0x38] sm:$0xff]  }
 0x134   :  { %1447 = vmatpush1.bf16.msra.mxu0 %v2387_v55  ;;  %1490 = vmatpush1.bf16.msra.mxu1 %v2390_v56  ;;  %v2474_v55 = vld [vmem:[%s2777_s5 + $0x30] sm:$0xff]   ;;  %v2475_v56 = vld [vmem:[%s2777_s5 + $0x68] sm:$0xff]  }
 0x135   :  { %1448 = vmatprep.subr.bf16.mxu0 %v2395_v57  ;;  %1491 = vmatprep.subr.bf16.mxu1 %v2398_v58  ;;  %v2476_v57 = vld [vmem:[%s2777_s5 + $0x28] sm:$0xff]   ;;  %v2479_v58 = vld [vmem:[%s2777_s5 + $0x58] sm:$0xff]  }
 0x138   :  { %1449 = vmatpush1.bf16.msra.mxu0 %v2393_v59  ;;  %1492 = vmatpush1.bf16.msra.mxu1 %v2396_v60  ;;  %v2480_v59 = vld [vmem:[%s2777_s5 + $0x18] sm:$0xff]   ;;  %v2481_v60 = vld [vmem:[%s2777_s5 + $0x50] sm:$0xff]  }
 0x139   :  { %1450 = vmatprep.subr.bf16.mxu0 %v2401_v61  ;;  %1493 = vmatprep.subr.bf16.mxu1 %v2404_v62  ;;  %v2487_v61 = vld [vmem:[%s2777_s5 + $0xf8] sm:$0xff]  }
 0x13a   :  { %v2488_v62 = vld [vmem:[%s2777_s5 + $0xb8] sm:$0xff]  }
 0x13c   :  { %1451 = vmatpush1.bf16.msra.mxu0 %v2399_v63  ;;  %1494 = vmatpush1.bf16.msra.mxu1 %v2402_v0  ;;  %v2489_v63 = vld [vmem:[%s2777_s5 + $0xf0] sm:$0xff]  }
 0x13d   :  { %1452 = vmatprep.subr.bf16.mxu0 %v2407_v1  ;;  %1495 = vmatprep.subr.bf16.mxu1 %v2410_v2  ;;  %v2482_v0 = vld [vmem:[%s2777_s5 + $0x10] sm:$0xff]   ;;  %v2483_v1 = vld [vmem:[%s2777_s5 + $0x48] sm:$0xff]  }
 0x13e   :  { %v2490_v2 = vld [vmem:[%s2777_s5 + $0xb0] sm:$0xff]  }
 0x140   :  { %1453 = vmatpush1.bf16.msra.mxu0 %v2405_v3  ;;  %1496 = vmatpush1.bf16.msra.mxu1 %v2408_v4  ;;  %v2491_v3 = vld [vmem:[%s2777_s5 + $0xe8] sm:$0xff]  }
 0x141   :  { %1454 = vmatprep.subr.bf16.mxu0 %v2413_v5  ;;  %1497 = vmatprep.subr.bf16.mxu1 %v2416_v6  ;;  %v2484_v4 = vld [vmem:[%s2777_s5 + $0x8] sm:$0xff]   ;;  %v2485_v5 = vld [vmem:[%s2777_s5 + $0x40] sm:$0xff]  }
 0x142   :  { %v2492_v6 = vld [vmem:[%s2777_s5 + $0xa8] sm:$0xff]  }
 0x144   :  { %1455 = vmatpush1.bf16.msra.mxu0 %v2411_v7  ;;  %1498 = vmatpush1.bf16.msra.mxu1 %v2414_v8  ;;  %v2493_v7 = vld [vmem:[%s2777_s5 + $0xe0] sm:$0xff]  }
 0x145   :  { %1456 = vmatprep.subr.bf16.mxu0 %v2419_v14  ;;  %1499 = vmatprep.subr.bf16.mxu1 %v2422_v15  ;;  %v2486_v8 = vld [vmem:[%s2777_s5] sm:$0xff]   ;;  %v2495_v15 = vld [vmem:[%s2777_s5 + $0xd8] sm:$0xff]  }
 0x146   :  { %v2494_v14 = vld [vmem:[%s2777_s5 + $0xa0] sm:$0xff]  }
 0x148   :  { %1457 = vmatpush1.bf16.msra.mxu0 %v2417_v16  ;;  %1500 = vmatpush1.bf16.msra.mxu1 %v2420_v17  ;;  %v2496_v16 = vld [vmem:[%s2777_s5 + $0x98] sm:$0xff]   ;;  %v2497_v17 = vld [vmem:[%s2777_s5 + $0xd0] sm:$0xff]  }
 0x149   :  { %1458 = vmatprep.subr.bf16.mxu0 %v2425_v18  ;;  %1501 = vmatprep.subr.bf16.mxu1 %v2428_v19  ;;  %v2498_v18 = vld [vmem:[%s2777_s5 + $0x90] sm:$0xff]   ;;  %v2499_v19 = vld [vmem:[%s2777_s5 + $0xc8] sm:$0xff]  }
 0x14c   :  { %1459 = vmatpush2.bf16.msra.mxu0 %v2423_v20  ;;  %1502 = vmatpush2.bf16.msra.mxu1 %v2426_v21  ;;  %v2500_v20 = vld [vmem:[%s2777_s5 + $0x88] sm:$0xff]   ;;  %v2501_v21 = vld [vmem:[%s2777_s5 + $0xc0] sm:$0xff]  }
 0x14d   :  { %1460 = vmatprep.subr.bf16.mxu0 %v2431_v22  ;;  %1503 = vmatprep.subr.bf16.mxu1 %v2434_v23  ;;  %v2502_v22 = vld [vmem:[%s2777_s5 + $0x80] sm:$0xff]  }
 0x14e   :  { %v694_v23 = vld [vmem:[%s2776_s4] sm:$0xf] }
 0x150   :  { %1461 = vmatpush2.bf16.msra.mxu0 %v2429_v24  ;;  %1504 = vmatpush2.bf16.msra.mxu1 %v2432_v25  ;;  %v703_v24 = vrot.slane %v694_v23, %v134_v10  ;;  %v699_v25 = vrot.slane %v694_v23, %v130_v12 }
 0x151   :  { %1462 = vmatprep.subr.bf16.mxu0 %v2437_v26  ;;  %1505 = vmatprep.subr.bf16.mxu1 %v2440_v27 }
 0x154   :  { %1463 = vmatpush2.bf16.msra.mxu0 %v2435_v28  ;;  %1506 = vmatpush2.bf16.msra.mxu1 %v2438_v29 }
 0x155   :  { %1464 = vmatprep.subr.bf16.mxu0 %v2443_v30  ;;  %1507 = vmatprep.subr.bf16.mxu1 %v2446_v31 }
 0x158   :  { %1465 = vmatpush2.bf16.msra.mxu0 %v2441_v32  ;;  %1508 = vmatpush2.bf16.msra.mxu1 %v2444_v33 }
 0x159   :  { %1466 = vmatprep.subr.bf16.mxu0 %v2449_v34  ;;  %1509 = vmatprep.subr.bf16.mxu1 %v2452_v35 }
 0x15c   :  { %1467 = vmatpush2.bf16.msra.mxu0 %v2447_v36  ;;  %1510 = vmatpush2.bf16.msra.mxu1 %v2450_v37 }
 0x15d   :  { %1468 = vmatprep.subr.bf16.mxu0 %v2455_v38  ;;  %1511 = vmatprep.subr.bf16.mxu1 %v2458_v39 }
 0x160   :  { %1469 = vmatpush2.bf16.msra.mxu0 %v2453_v40  ;;  %1512 = vmatpush2.bf16.msra.mxu1 %v2456_v41 }
 0x161   :  { %1470 = vmatprep.subr.bf16.mxu0 %v2461_v42  ;;  %1513 = vmatprep.subr.bf16.mxu1 %v2464_v43 }
 0x164   :  { %1471 = vmatpush2.bf16.msra.mxu0 %v2459_v44  ;;  %1514 = vmatpush2.bf16.msra.mxu1 %v2462_v45 }
 0x165   :  { %1472 = vmatprep.subr.bf16.mxu0 %v2467_v46  ;;  %1515 = vmatprep.subr.bf16.mxu1 %v2470_v49  ;;  %v711_v46 = vrot.slane %v694_v23, %v142_v11  ;;  %v707_v49 = vrot.slane %v694_v23, %v138_v13 }
 0x168   :  { %1473 = vmatpush2.bf16.msra.mxu0 %v2465_v50  ;;  %1516 = vmatpush2.bf16.msra.mxu1 %v2468_v51 }
 0x169   :  { %2132 = vmatprep.subr.bf16.mxu0 %v2471_v52  ;;  %2154 = vmatprep.subr.bf16.mxu1 %v2487_v61 }
 0x16b   :  { %1475 = vmatmul.mubr.bf16.vlgmr.msra.gmra.mxu0 %v2651_v47  ;;  %1518 = vmatmul.mubr.bf16.vlgmr.msra.gmra.mxu1 %v2653_v48  ;;  %v2477_v47 = vld [vmem:[%s2777_s5 + $0x60] sm:$0xff]  }
 0x16c   :  { %2133 = vmatpush3.bf16.msra.mxu0 %v2472_v53  ;;  %v2478_v48 = vld [vmem:[%s2777_s5 + $0x20] sm:$0xff]   ;;  %2155 = vmatpush3.bf16.msra.mxu1 %v2488_v62 }
 0x16d   :  { %2134 = vmatprep.subr.bf16.mxu0 %v2473_v54  ;;  %2156 = vmatprep.subr.bf16.mxu1 %v2489_v63 }
 0x170   :  { %2135 = vmatpush3.bf16.msra.mxu0 %v2474_v55  ;;  %2157 = vmatpush3.bf16.msra.mxu1 %v2490_v2 }
 0x171   :  { %2136 = vmatprep.subr.bf16.mxu0 %v2475_v56  ;;  %2158 = vmatprep.subr.bf16.mxu1 %v2491_v3 }
 0x174   :  { %2137 = vmatpush3.bf16.msra.mxu0 %v2476_v57  ;;  %2159 = vmatpush3.bf16.msra.mxu1 %v2492_v6 }
 0x175   :  { %2138 = vmatprep.subr.bf16.mxu0 %v2477_v47  ;;  %2160 = vmatprep.subr.bf16.mxu1 %v2493_v7  ;;  %v2099_v7 = vld [vmem:[%s2778_s6] ss:$0 sm:$0xff]  ;;  %s2543_s6 = scalar_lea.vmem %s1895_s9, 256 }
 0x176   :  { %p2544_p10 = scmp.ne.s32.totalorder %s1895_s9, %s2543_s6  ;;  %p2549_p12 = scmp.lt.s32.totalorder %s2543_s6, %s2543_s6 }
 0x178   :  { %2139 = vmatpush3.bf16.msra.mxu0 %v2478_v48  ;;  %2161 = vmatpush3.bf16.msra.mxu1 %v2494_v14  ;;  %p2550_p13 = por %p2549_p12, %p2548_p11 }
 0x179   :  { %2140 = vmatprep.subr.bf16.mxu0 %v2479_v58  ;;  %2162 = vmatprep.subr.bf16.mxu1 %v2495_v15 }
 0x17a   :  { %p2551_p0 = pnand %p2550_p13, %p2544_p10 }
 0x17c   :  { %2141 = vmatpush3.bf16.msra.mxu0 %v2480_v59  ;;  %2163 = vmatpush3.bf16.msra.mxu1 %v2496_v16 }
 0x17d   :  { %2142 = vmatprep.subr.bf16.mxu0 %v2481_v60  ;;  %2164 = vmatprep.subr.bf16.mxu1 %v2497_v17 }
 0x180   :  { %2143 = vmatpush3.bf16.msra.mxu0 %v2482_v0  ;;  %2165 = vmatpush3.bf16.msra.mxu1 %v2498_v18 }
 0x181   :  { %2144 = vmatprep.subr.bf16.mxu0 %v2483_v1  ;;  %2166 = vmatprep.subr.bf16.mxu1 %v2499_v19 }
 0x184   :  { %2145 = vmatpush3.bf16.msra.mxu0 %v2484_v4  ;;  %2167 = vmatpush3.bf16.msra.mxu1 %v2500_v20 }
 0x185   :  { %2146 = vmatprep.subr.bf16.mxu0 %v2485_v5  ;;  %2168 = vmatprep.subr.bf16.mxu1 %v2501_v21 }
 0x188   :  { %2147 = vmatpush3.bf16.msra.mxu0 %v2486_v8  ;;  %2169 = vmatpush3.bf16.msra.mxu1 %v2502_v22 }
 0x1eb   :  { %v1390_v26 = vpop.f32.mrf.mxu0  ;;  %v1433_v27 = vpop.f32.mrf.mxu1 }
 0x1ec   :  { %v1391_v31 = vadd.f32 %v1390_v26, %v699_v25 }
 0x1ed   :  { %v1392_v28 = vpop.f32.mrf.mxu0  ;;  %v1435_v29 = vpop.f32.mrf.mxu1 }
 0x1ee   :  { %v1393_v30 = vadd.f32 %v1392_v28, %v703_v24  ;;  %v1434_v39 = vadd.f32 %v1433_v27, %v1391_v31 }
 0x1ef   :  { %v1394_v32 = vpop.f32.mrf.mxu0  ;;  %v1437_v33 = vpop.f32.mrf.mxu1 }
 0x1f0   :  { %v1395_v34 = vadd.f32 %v1394_v32, %v699_v25  ;;  %v1436_v36 = vadd.f32 %v1435_v29, %v1393_v30  ;;  %v1528_v12 = vmax.f32 %v1434_v39, 0.0 }
 0x1f1   :  { %v1396_v35 = vpop.f32.mrf.mxu0  ;;  %v1439_v40 = vpop.f32.mrf.mxu1 }
 0x1f2   :  { %v1438_v37 = vadd.f32 %v1437_v33, %v1395_v34  ;;  %v1397_v38 = vadd.f32 %v1396_v35, %v703_v24  ;;  %v1529_v42 = vmax.f32 %v1436_v36, 0.0 }
 0x1f4   :  { %v1440_v41 = vadd.f32 %v1439_v40, %v1397_v38  ;;  %v1532_v10 = vmax.f32 %v1438_v37, 0.0 }
 0x1f6   :  { %v1533_v43 = vmax.f32 %v1440_v41, 0.0  ;;  %v1536_v45 = vpack.c.bf16 %v1532_v10, %v1528_v12 }
 0x1f8   :  { %v1537_v44 = vpack.c.bf16 %v1533_v43, %v1529_v42 }
 0x1fa   :  { %1835 = vmatprep.mubr.bf16.mxu0 %v1537_v44 }
 0x1fb   :  { %1836 = vmatmul.mubr.bf16.vlgmr.msra.gmra.mxu0 %v1536_v45 }
 0x22b   :  { %v1476_v50 = vpop.f32.mrf.mxu0  ;;  %v1519_v51 = vpop.f32.mrf.mxu1 }
 0x22c   :  { %v1477_v55 = vadd.f32 %v1476_v50, %v707_v49 }
 0x22d   :  { %v1478_v52 = vpop.f32.mrf.mxu0  ;;  %v1521_v53 = vpop.f32.mrf.mxu1 }
 0x22e   :  { %v1479_v54 = vadd.f32 %v1478_v52, %v711_v46  ;;  %v1520_v61 = vadd.f32 %v1519_v51, %v1477_v55 }
 0x22f   :  { %v1480_v56 = vpop.f32.mrf.mxu0  ;;  %v1523_v57 = vpop.f32.mrf.mxu1 }
 0x230   :  { %v1481_v47 = vadd.f32 %v1480_v56, %v707_v49  ;;  %v1522_v58 = vadd.f32 %v1521_v53, %v1479_v54  ;;  %v1530_v13 = vmax.f32 %v1520_v61, 0.0 }
 0x231   :  { %v1482_v48 = vpop.f32.mrf.mxu0  ;;  %v1525_v62 = vpop.f32.mrf.mxu1 }
 0x232   :  { %v1524_v59 = vadd.f32 %v1523_v57, %v1481_v47  ;;  %v1483_v60 = vadd.f32 %v1482_v48, %v711_v46  ;;  %v1531_v0 = vmax.f32 %v1522_v58, 0.0 }
 0x234   :  { %v1526_v63 = vadd.f32 %v1525_v62, %v1483_v60  ;;  %v1534_v11 = vmax.f32 %v1524_v59, 0.0 }
 0x236   :  { %v1535_v9 = vmax.f32 %v1526_v63, 0.0  ;;  %v1538_v2 = vpack.c.bf16 %v1534_v11, %v1530_v13 }
 0x238   :  { %v1539_v1 = vpack.c.bf16 %v1535_v9, %v1531_v0 }
 0x23a   :  { %1876 = vmatprep.mubr.bf16.mxu1 %v1539_v1 }
 0x23b   :  { %1877 = vmatmul.mubr.bf16.vlgmr.msra.gmra.mxu1 %v1538_v2 }
 0x2bb   :  { %v2148_v3 = vpop.f32.mrf.mxu0 }
 0x2bd   :  { %v2149_v4 = vpop.f32.mrf.mxu0 }
 0x2be   :  { %v2150_v6 = vadd.f32 %v2149_v4, %v2148_v3 }
 0x2bf   :  { %v2151_v5 = vpop.f32.mrf.mxu0 }
 0x2c0   :  { %v1838_v16 = vadd.f32 %v2150_v6, %v2099_v7 }
 0x2c1   :  { %v2152_v8 = vpop.f32.mrf.mxu0 }
 0x2c2   :  { %v2153_v17 = vadd.f32 %v2152_v8, %v2151_v5 }
 0x2c4   :  { %v1841_v22 = vadd.f32 %v2153_v17, %v2099_v7 }
 0x2fb   :  { %v2170_v14 = vpop.f32.mrf.mxu1 }
 0x2fd   :  { %v2171_v15 = vpop.f32.mrf.mxu1 }
 0x2fe   :  { %v2172_v18 = vadd.f32 %v2171_v15, %v2170_v14 }
 0x2ff   :  { %v2173_v19 = vpop.f32.mrf.mxu1 }
 0x300   :  { %v1879_v20 = vadd.f32 %v2172_v18, %v1838_v16 }
 0x301   :  { %v2174_v21 = vpop.f32.mrf.mxu1 }
 0x302   :  { %v1885_v23 = vmax.f32 %v1879_v20, 0.0  ;;  %v2175_v24 = vadd.f32 %v2174_v21, %v2173_v19 }
 0x304   :  { %1887 = vst [vmem:[#allocation7] sm:$0xff] %v1885_v23  ;;  %v1882_v25 = vadd.f32 %v2175_v24, %v1841_v22 }
 0x306   :  { %v1886_v26 = vmax.f32 %v1882_v25, 0.0 }
 0x308   :  { %1888 = vst [vmem:[#allocation7 + $0x8] sm:$0xff] %v1886_v26 }
 0x309   :  { %2554 = shalt.err (!%p2551_p0)
}
 0x30a   :  { %s2574_s10 = smov 128   ;;  %s2575_s11 = smov 8  }
 0x30b   :  { %1900 = dma.vmem_to_hbm [thread:$0]  %s1895_s9, 256, %s2779_s7, [#allocation4], %s2574_s10, %s2574_s10, %s2575_s11  }
 0x30c   :  { %2567 = dma.done.wait [#allocation4], 256  }
 0x30d   :  { %2568 = vsyncadd [#allocation4], 4294967040 }
 0x30e   :  { %1904 = vsyncpa [#allocation3], 1 }
 0x30f   :  { %1905 = vsyncpa [#allocation6], 1 }
 0x310   :  { %1906 = vsyncpa [#allocation4], 1 }

</bundles_post_ra>
